<compile_context>
chip_gen: v5e
topology: v5e:2x2
jax: 0.10.0
libtpu: 0.0.40
codegen_flags: <defaults>
</compile_context>

<pallas_src>
import math

import jax
import jax.numpy as jnp
from jax.experimental import pallas as pl
from jax.experimental.pallas import tpu as pltpu


_TARGET_BLOCK_BYTES = 2 * 1024 * 1024  # ~2 MiB input tile (x4 with dbl-buffered in+out)


# ----------------------------------------------------------------------------
# Pallas kernel: fused shift/scale   y = (x - c) * a + b
# c, a, b are (1, L) row vectors broadcast over the batch tile.
# ----------------------------------------------------------------------------
def _shift_scale_kernel(x_ref, c_ref, a_ref, b_ref, o_ref):
    x = x_ref[...].astype(jnp.float32)          # in-register up-cast (v5e-safe)
    y = (x - c_ref[...]) * a_ref[...] + b_ref[...]
    o_ref[...] = y.astype(o_ref.dtype)          # store in native dtype


def _round_up(n: int, m: int) -> int:
    return (n + m - 1) // m * m


def _pick_tile_rows(num_rows: int, row_bytes: int) -> int:
    """Rows per batch tile: ~_TARGET_BLOCK_BYTES per input block, a multiple of
    8, and >=2 grid steps when the batch allows it (so both v7x TCs get work)."""
    if num_rows <= 8:
        return num_rows                      # full-extent block, single step
    rows = max(_TARGET_BLOCK_BYTES // max(row_bytes, 1), 8)
    rows = min(rows, max(pl.cdiv(num_rows, 2), 8))
    return int(_round_up(rows, 8))


@jax.jit
def _shift_scale_pallas(x, c, a, b):
    """y[i, d] = (x[i, d] - c[d]) * a[d] + b[d] via one fused pallas_call."""
    orig_shape = x.shape
    B, D = x.shape
    c = c.astype(jnp.float32)
    a = a.astype(jnp.float32)
    b = b.astype(jnp.float32)

    # Lane density without HBM padding: fold R rows into one when possible.
    if D % 128 != 0:
        R = 128 // math.gcd(D, 128)
        if R > 1 and B % R == 0:
            B, D = B // R, R * D
            x = x.reshape(B, D)              # free row-major reshape (bitcast)
            c, a, b = (jnp.tile(v, R) for v in (c, a, b))  # tiny vectors

    TB = _pick_tile_rows(B, D * x.dtype.itemsize)
    grid = (pl.cdiv(B, TB),)                 # ragged last block masked by Pallas

    out = pl.pallas_call(
        _shift_scale_kernel,
        out_shape=jax.ShapeDtypeStruct((B, D), x.dtype),
        grid=grid,
        in_specs=[
            pl.BlockSpec((TB, D), lambda i: (i, 0)),
            pl.BlockSpec((1, D), lambda i: (0, 0)),
            pl.BlockSpec((1, D), lambda i: (0, 0)),
            pl.BlockSpec((1, D), lambda i: (0, 0)),
        ],
        out_specs=pl.BlockSpec((TB, D), lambda i: (i, 0)),
        compiler_params=pltpu.CompilerParams(
            dimension_semantics=("parallel",),
        ),
    )(x, c.reshape(1, D), a.reshape(1, D), b.reshape(1, D))

    return out.reshape(orig_shape)


@jax.jit
def scalar_normalize_forward(x, mean, norm, scale):
    # (x - mean) / (norm * scale)  ==  (x - mean) * inv
    # TODO(synk): zero-variance features (norm == 0) produce inf/nan, same as
    # the PyTorch original; clamp norm upstream if that can occur.
    ns = norm.astype(jnp.float32) * scale
    inv = 1.0 / ns
    zero = jnp.zeros_like(inv)
    return _shift_scale_pallas(x, mean.astype(jnp.float32), inv, zero)


@jax.jit
def scalar_normalize_inverse(x, mean, norm, scale):
    # x * (norm * scale) + mean  ==  (x - 0) * ns + mean
    ns = norm.astype(jnp.float32) * scale
    zero = jnp.zeros_like(ns)
    return _shift_scale_pallas(x, zero, ns, mean.astype(jnp.float32))


# ----------------------------------------------------------------------------
# Module equivalent
# ----------------------------------------------------------------------------
class ScalarNormalizePallas:
    """JAX/Pallas port of ScalarNormalize.

    Normalizes [num_samples, num_features] data, each feature individually:
      forward: (data - mean) / (norm * scale)
      inverse: data * (norm * scale) + mean
    """

    def __init__(self, num_features: int, mean=None, norm=None, scale: float = 1.0):
        self.scale = float(scale)
        self.num_features = num_features
        self.mean_norm_initialized = mean is not None and norm is not None
        self.mean = (jnp.zeros((num_features,), jnp.float32)
                     if mean is None else jnp.asarray(mean, jnp.float32))
        self.norm = (jnp.zeros((num_features,), jnp.float32)
                     if norm is None else jnp.asarray(norm, jnp.float32))

    def forward(self, data):
        if not self.mean_norm_initialized:
            raise RuntimeError("mean and norm not initialized.")
        return scalar_normalize_forward(data, self.mean, self.norm, self.scale)

    def inverse(self, data):
        if not self.mean_norm_initialized:
            raise RuntimeError("mean and norm not initialized.")
        return scalar_normalize_inverse(data, self.mean, self.norm, self.scale)

    def compute_statistics(self, data):
        # TODO(synk): sklearn StandardScaler replaced with plain jnp mean / std
        # (population std), evaluated on host; not a Pallas kernel.
        assert data.ndim == 2, "Can only deal with tensor [N_samples, N_features]"
        mean = jnp.mean(data, axis=0)
        std = jnp.std(data, axis=0)
        self.mean = mean.astype(jnp.float32)
        self.norm = std.astype(jnp.float32)
        self.mean_norm_initialized = True
        return mean, std


# ----------------------------------------------------------------------------
# Main
# ----------------------------------------------------------------------------
if __name__ == "__main__":
    key = jax.random.PRNGKey(0)
    num_features = 21
    scale = 1.0

    k1, k2, k3, k4 = jax.random.split(key, 4)
    mean = jax.random.normal(k2, (num_features,), dtype=jnp.float32) * 0.1
    norm = jax.random.uniform(k3, (num_features,), dtype=jnp.float32,
                              minval=0.5, maxval=2.0)

    module = ScalarNormalizePallas(num_features, mean=mean, norm=norm, scale=scale)

    ok = True
    # batch=8 exercises the full-extent (TB, D) block path; batch=256 exercises
    # the lane-dense (B/R, R*D) reshape path (256 % 128 == 0 for D=21).
    for batch, kk in ((8, k1), (256, k4)):
        x = jax.random.normal(kk, (batch, num_features), dtype=jnp.float32)

        y = jax.block_until_ready(module.forward(x))
        ref_fwd = (x - mean[None, :]) / (norm[None, :] * scale)
        ok &= bool(jnp.allclose(y, ref_fwd, atol=1e-5, rtol=1e-5))

        x_rec = jax.block_until_ready(module.inverse(y))
        ref_inv = y * (norm[None, :] * scale) + mean[None, :]
        ok &= bool(jnp.allclose(x_rec, ref_inv, atol=1e-5, rtol=1e-5))
        ok &= bool(jnp.allclose(x_rec, x, atol=1e-4, rtol=1e-4))

    print("KERNEL_OK" if ok else "KERNEL_MISMATCH")
</pallas_src>

<mosaic_0001>
module attributes {stable_mosaic.version = 11 : i64} {
  func.func @_shift_scale_kernel(%arg0: i32, %arg1: memref<8x21xf32, #tpu.memory_space<vmem>>, %arg2: memref<1x21xf32, #tpu.memory_space<vmem>>, %arg3: memref<1x21xf32, #tpu.memory_space<vmem>>, %arg4: memref<1x21xf32, #tpu.memory_space<vmem>>, %arg5: memref<8x21xf32, #tpu.memory_space<vmem>>) attributes {dimension_semantics = [#tpu.dimension_semantics<parallel>], iteration_bounds = array<i64: 1>, scalar_prefetch = 0 : i64, scratch_operands = 0 : i64, tpu.core_type = #tpu.core_type<tc>, window_params = [{transform_indices = @transform_0, window_bounds = array<i64: 8, 21>}, {pipeline_mode = #tpu.pipeline_mode<synchronous>, transform_indices = @transform_1, window_bounds = array<i64: 1, 21>}, {pipeline_mode = #tpu.pipeline_mode<synchronous>, transform_indices = @transform_2, window_bounds = array<i64: 1, 21>}, {pipeline_mode = #tpu.pipeline_mode<synchronous>, transform_indices = @transform_3, window_bounds = array<i64: 1, 21>}, {transform_indices = @transform_4, window_bounds = array<i64: 8, 21>}]} {
    %c0 = arith.constant 0 : index
    %c0_0 = arith.constant 0 : index
    %0 = vector.load %arg1[%c0, %c0_0] : memref<8x21xf32, #tpu.memory_space<vmem>>, vector<8x21xf32>
    %c0_1 = arith.constant 0 : index
    %c0_2 = arith.constant 0 : index
    %1 = vector.load %arg2[%c0_1, %c0_2] : memref<1x21xf32, #tpu.memory_space<vmem>>, vector<1x21xf32>
    %2 = vector.broadcast %1 : vector<1x21xf32> to vector<8x21xf32>
    %3 = arith.subf %0, %2 : vector<8x21xf32>
    %c0_3 = arith.constant 0 : index
    %c0_4 = arith.constant 0 : index
    %4 = vector.load %arg3[%c0_3, %c0_4] : memref<1x21xf32, #tpu.memory_space<vmem>>, vector<1x21xf32>
    %5 = vector.broadcast %4 : vector<1x21xf32> to vector<8x21xf32>
    %6 = arith.mulf %3, %5 : vector<8x21xf32>
    %c0_5 = arith.constant 0 : index
    %c0_6 = arith.constant 0 : index
    %7 = vector.load %arg4[%c0_5, %c0_6] : memref<1x21xf32, #tpu.memory_space<vmem>>, vector<1x21xf32>
    %8 = vector.broadcast %7 : vector<1x21xf32> to vector<8x21xf32>
    %9 = arith.addf %6, %8 : vector<8x21xf32>
    %c0_7 = arith.constant 0 : index
    %c0_8 = arith.constant 0 : index
    %10 = vector.load %arg5[%c0_7, %c0_8] : memref<8x21xf32, #tpu.memory_space<vmem>>, vector<8x21xf32>
    tpu.vector_store %arg5[%c0_7, %c0_8], %9 {strides = array<i32>} : memref<8x21xf32, #tpu.memory_space<vmem>>, vector<8x21xf32>,
    return
  }
  func.func @transform_0(%arg0: i32) -> (i32, i32) {
    %c0_i32 = arith.constant 0 : i32
    %c0_i32_0 = arith.constant 0 : i32
    return %arg0, %c0_i32 : i32, i32
  }
  func.func @transform_1(%arg0: i32) -> (i32, i32) {
    %c0_i32 = arith.constant 0 : i32
    %c0_i32_0 = arith.constant 0 : i32
    %c0_i32_1 = arith.constant 0 : i32
    return %c0_i32, %c0_i32_0 : i32, i32
  }
  func.func @transform_2(%arg0: i32) -> (i32, i32) {
    %c0_i32 = arith.constant 0 : i32
    %c0_i32_0 = arith.constant 0 : i32
    %c0_i32_1 = arith.constant 0 : i32
    return %c0_i32, %c0_i32_0 : i32, i32
  }
  func.func @transform_3(%arg0: i32) -> (i32, i32) {
    %c0_i32 = arith.constant 0 : i32
    %c0_i32_0 = arith.constant 0 : i32
    %c0_i32_1 = arith.constant 0 : i32
    return %c0_i32, %c0_i32_0 : i32, i32
  }
  func.func @transform_4(%arg0: i32) -> (i32, i32) {
    %c0_i32 = arith.constant 0 : i32
    %c0_i32_0 = arith.constant 0 : i32
    return %arg0, %c0_i32 : i32, i32
  }
}

</mosaic_0001>

<bundles_post_ra>
// kernel: _shift_scale_pallas.1
= control target key start
LH: loop header
LB: loop body
LE: loop exit
PB: predicated region body
PF: predicated region fallthrough
CT: control target
= control target key end

     0   :  { %9 = vsyncpa [#allocation3], 0  ;;  %s166_s0 = inlined_call_operand.hbm [shape: f32[8,21], index: 0, kind: input, shape index: {}]   ;;  %s167_s1 = inlined_call_operand.vmem [shape: f32[1,21], index: 1, kind: input, shape index: {}]   ;;  %s168_s2 = inlined_call_operand.vmem [shape: f32[1,21], index: 2, kind: input, shape index: {}]   ;;  %s169_s3 = inlined_call_operand.vmem [shape: f32[1,21], index: 3, kind: input, shape index: {}]   ;;  %s170_s4 = inlined_call_operand.hbm [shape: f32[8,21], index: 4, kind: output, shape index: {}]  }
   0x1   :  { %10 = vsyncpa [#allocation4], 0  ;;  %s16_s17 = sshll.u32 %s166_s0, 4  ;;  %s124_s18 = smov [#allocation2]   ;;  %s17_s17 = int_to_ptr.hbm [resolvable:$true] %s16_s17 }
   0x2   :  { %s18_s19 = sshll.u32 %s124_s18, 4  ;;  %s19_s19 = int_to_ptr.vmem [resolvable:$true] %s18_s19 }
   0x3   :  { %21 = dma.hbm_to_vmem [thread:$0]  %s17_s17, 128, %s19_s19, [#allocation3]  }
   0x4   :  { %120 = dma.done.wait [#allocation3], 128  }
   0x5   :  { %121 = vsyncadd [#allocation3], 4294967168  ;;  %v32_v0 = vld [vmem:[#allocation2] sm:$0xff]  ;;  %s125_s0 = smov [#allocation5]   ;;  %s57_s29 = sshll.u32 %s170_s4, 4  ;;  %vm48_vm0 = vcmask 171008   ;;  %s58_s29 = int_to_ptr.hbm [resolvable:$true] %s57_s29 }
   0x6   :  { %v69_v1 = vld [vmem:[%s167_s1] ss:$0 sm:$0xff]  ;;  %s55_s26 = sshll.u32 %s125_s0, 4  ;;  %s56_s26 = int_to_ptr.vmem [resolvable:$true] %s55_s26 }
   0x7   :  { %v70_v2 = vld [vmem:[%s168_s2] ss:$0 sm:$0xff]  ;;  %v37_v3 = vsub.f32 %v32_v0, %v69_v1 }
   0x8   :  { %v71_v4 = vld [vmem:[%s169_s3] ss:$0 sm:$0xff] }
   0x9   :  { %v42_v5 = vmul.f32 %v70_v2, %v37_v3 }
   0xb   :  { %v47_v6 = vadd.f32 %v71_v4, %v42_v5 }
   0xd   :  { %49 = vst.msk [vmem:[#allocation5] sm:$0xff] %vm48_vm0, %v47_v6 }
   0xe   :  { %60 = dma.vmem_to_hbm [thread:$0]  %s56_s26, 128, %s58_s29, [#allocation4]  }
   0xf   :  { %122 = dma.done.wait [#allocation4], 128  }
  0x10   :  { %123 = vsyncadd [#allocation4], 4294967168 }
  0x11   :  { %65 = vsyncpa [#allocation3], 1 }
  0x12   :  { %66 = vsyncpa [#allocation4], 1 }

</bundles_post_ra>
